<compile_context>
chip_gen: v7x
topology: tpu7x:2x2x1
jax: 0.10.0
libtpu: 0.0.40
codegen_flags: <defaults>
</compile_context>

<pallas_src>
import jax
import jax.numpy as jnp
from jax.experimental import pallas as pl
from jax.experimental.pallas import tpu as pltpu


_ACTIVATIONS = {
    "tanh": jnp.tanh,
    "relu": jax.nn.relu,
    "sigmoid": jax.nn.sigmoid,
    "elu": jax.nn.elu,
    "selu": jax.nn.selu,
    "softplus": jax.nn.softplus,
    "softsign": jax.nn.soft_sign,
    "leaky_relu": jax.nn.leaky_relu,
    "none": lambda v: v,
}


def _round_up(x, m):
    return ((x + m - 1) // m) * m


def _chip_info():
    """(vmem_capacity_bytes, num_tensorcores, bf16_elementwise_ok).

    Conservative fallbacks (64 MiB VMEM, 1 TC, f32 elementwise) keep the kernel
    correct on any generation if the queries are unavailable."""
    vmem_cap = 64 * 1024 * 1024
    num_tc = 1
    bf16_elt = False
    try:
        info = pltpu.get_tpu_info()
        vmem_cap = int(getattr(info, "vmem_capacity_bytes", vmem_cap))
    except Exception:
        pass
    try:
        kind = jax.devices()[0].device_kind.lower()
        if "v7" in kind or "tpu7" in kind:
            num_tc = 2                       # v7x: 2 TensorCores per chip
        # bf16 VPU/EUP path exists on v6e and later; v5e and older stay f32.
        bf16_elt = any(tag in kind for tag in ("v6", "v7", "tpu7"))
    except Exception:
        pass
    return vmem_cap, num_tc, bf16_elt


def _pick_tile_b(batch, max_tile_b, num_tc):
    """Batch (M) tile.  Single-TC chips (v5e/v6e): largest tile under the cap,
    never splitting a batch that fits in one step.  Multi-TC (v7x): split the
    batch evenly across cores, 16-row (bf16 sublane) aligned, so
    dimension_semantics=("parallel",) hands each core a balanced share."""
    max_tile_b = max(8, _round_up(max_tile_b, 8))
    full = _round_up(batch, 8)
    if num_tc > 1 and batch > 16 and full > 16:
        balanced = _round_up(pl.cdiv(batch, num_tc), 16)
        return min(max_tile_b, full, max(16, balanced))
    return min(max_tile_b, full)


def _make_mlp_kernel(act_fn, elt_dtype):
    """Fused 2-layer MLP on one batch tile.  bf16 MXU inputs, f32 accumulation;
    bias-add + activation run in `elt_dtype` (bf16 on v6e/v7x, f32 on v5e)."""
    def kernel(x_ref, w1_ref, b1_ref, w2_ref, b2_ref, o_ref):
        # Cast the activation tile to bf16 *inside* the kernel: no wrapper-side
        # pad/astype passes over x in HBM.
        x = x_ref[...].astype(jnp.bfloat16)                          # (tb, D)
        h = jnp.dot(x, w1_ref[...], preferred_element_type=jnp.float32)
        h = act_fn((h + b1_ref[...]).astype(elt_dtype))
        h = h.astype(jnp.bfloat16)          # no-op when elt_dtype is bf16
        y = jnp.dot(h, w2_ref[...], preferred_element_type=jnp.float32)
        y = act_fn((y + b2_ref[...]).astype(elt_dtype))
        o_ref[...] = y.astype(o_ref.dtype)
    return kernel


def mlp_forward(x, w1, b1, w2, b2, *, activation="tanh", out_dtype=None,
                max_tile_b=512):
    """Forward pass of a 2-layer BasicMLP.

    x: (B, D); w1: (D, H1); b1: (1, H1); w2: (H1, H2); b2: (1, H2).
    Pass weights pre-cast to bf16 to avoid a per-call HBM conversion pass.
    TODO(synk): nn.Dropout(p) from the PyTorch module is inference-mode identity.
    """
    B, d_in = x.shape
    dw, h1 = w1.shape
    hw, h2 = w2.shape
    assert dw == d_in and hw == h1, "weights must be (D, H1) and (H1, H2)"
    if out_dtype is None:
        out_dtype = x.dtype

    vmem_cap, num_tc, bf16_elt = _chip_info()
    elt_dtype = jnp.bfloat16 if bf16_elt else jnp.float32
    act_fn = _ACTIVATIONS[activation]

    # bf16 MXU weight inputs; no-op if the caller already cached bf16 copies.
    if w1.dtype != jnp.bfloat16:
        w1 = w1.astype(jnp.bfloat16)
    if w2.dtype != jnp.bfloat16:
        w2 = w2.astype(jnp.bfloat16)
    b1 = jnp.reshape(b1, (1, h1)).astype(jnp.float32)
    b2 = jnp.reshape(b2, (1, h2)).astype(jnp.float32)

    tile_b = _pick_tile_b(B, max_tile_b, num_tc)
    grid = (pl.cdiv(B, tile_b),)      # ragged B: Pallas masks the partial tile

    # VMEM budget: double-buffered x/out tiles, single-buffered resident
    # weights/biases, f32 intermediates + headroom; clamped to the chip's
    # actual VMEM (64 MiB on v7x) with ~15% left for compiler scratch.
    x_b = jnp.dtype(x.dtype).itemsize
    o_b = jnp.dtype(out_dtype).itemsize
    est = (2 * tile_b * d_in * x_b
           + 2 * tile_b * h2 * o_b
           + (d_in * h1 + h1 * h2) * 2
           + (h1 + h2) * 4
           + 2 * tile_b * (h1 + h2) * 4)
    vmem_limit = int(min(max(32 * 1024 * 1024, 2 * est), int(0.85 * vmem_cap)))

    # TODO(synk): for production hidden dims where bf16 W1+W2 approach ~half of
    # VMEM (esp. v7x's 64 MiB), add a grid axis over h2 (tile a multiple of 128
    # lanes) so W2 and the output stream instead of staying fully resident.
    # A deeper x/out pipeline (pl.Buffered(3)) is a further option for huge B.

    kernel = _make_mlp_kernel(act_fn, elt_dtype)

    def build(single_buffer_weights):
        if single_buffer_weights:
            # Constant-index-map operands are never re-fetched; Buffered(1)
            # drops the pointless second weight buffer (matters at large H).
            def wspec(shape):
                return pl.BlockSpec(shape, lambda i: (0, 0),
                                    pipeline_mode=pl.Buffered(1))
        else:
            def wspec(shape):
                return pl.BlockSpec(shape, lambda i: (0, 0))
        return pl.pallas_call(
            kernel,
            out_shape=jax.ShapeDtypeStruct((B, h2), out_dtype),
            grid_spec=pltpu.PrefetchScalarGridSpec(
                num_scalar_prefetch=0,
                grid=grid,
                in_specs=[
                    # x streams; block last dim == full array dim, so no
                    # 128-lane padding of D (and no wrapper pad pass) needed.
                    pl.BlockSpec((tile_b, d_in), lambda i: (i, 0)),
                    wspec((d_in, h1)),
                    wspec((1, h1)),
                    wspec((h1, h2)),
                    wspec((1, h2)),
                ],
                out_specs=pl.BlockSpec((tile_b, h2), lambda i: (i, 0)),
            ),
            compiler_params=pltpu.CompilerParams(
                dimension_semantics=("parallel",),
                vmem_limit_bytes=vmem_limit,
            ),
        )

    try:
        return build(single_buffer_weights=True)(x, w1, b1, w2, b2)
    except Exception:
        # Fallback if this toolchain rejects pipeline_mode=pl.Buffered(1) on
        # the resident operands; double-buffered weights are still correct,
        # just a larger VMEM footprint.
        return build(single_buffer_weights=False)(x, w1, b1, w2, b2)


def init_linear(key, in_dim, out_dim, dtype=jnp.float32):
    """Deterministic init mimicking nn.Linear's kaiming-uniform default;
    weights are stored pre-transposed as (in_dim, out_dim)."""
    kw, kb = jax.random.split(key)
    bound = 1.0 / (in_dim ** 0.5)
    w = jax.random.uniform(kw, (in_dim, out_dim), dtype, -bound, bound)
    b = jax.random.uniform(kb, (1, out_dim), dtype, -bound, bound)
    return w, b


def mlp_reference(x, w1, b1, w2, b2, activation="tanh"):
    act = _ACTIVATIONS[activation]
    h = act(x @ w1 + b1)
    return act(h @ w2 + b2)


if __name__ == "__main__":
    key = jax.random.PRNGKey(0)
    k_x, k_l1, k_l2, k_x2 = jax.random.split(key, 4)

    batch = 8
    input_dim = 32
    hidden_dims = (128, 128)   # BasicMLP(input_dim=32, output_dim=128, hidden_dims=[128])

    x = jax.random.normal(k_x, (batch, input_dim), jnp.float32)
    w1, b1 = init_linear(k_l1, input_dim, hidden_dims[0])
    w2, b2 = init_linear(k_l2, hidden_dims[0], hidden_dims[1])

    # Pre-cast/cache the bf16 weight copies once (perf feedback: don't pay an
    # HBM read+write pass over the weights on every forward call).
    w1_bf = w1.astype(jnp.bfloat16)
    w2_bf = w2.astype(jnp.bfloat16)

    # bf16 MXU inputs -> compare against the f32 reference with a looser tol.
    out = jax.block_until_ready(
        mlp_forward(x, w1_bf, b1, w2_bf, b2, activation="tanh"))
    ref = mlp_reference(x, w1, b1, w2, b2, "tanh")
    assert out.shape == (batch, hidden_dims[-1])
    assert out.dtype == x.dtype
    assert jnp.allclose(out, ref, atol=3e-2, rtol=3e-2)

    # Ragged multi-tile batch + bf16 output writeback (the dominant HBM term at
    # d_in=32).  Exercises the masked partial last tile and the balanced
    # two-TensorCore split on v7x.
    x2 = jax.random.normal(k_x2, (1000, input_dim), jnp.float32)
    out2 = jax.block_until_ready(
        mlp_forward(x2, w1_bf, b1, w2_bf, b2, activation="tanh",
                    out_dtype=jnp.bfloat16))
    ref2 = mlp_reference(x2, w1, b1, w2, b2, "tanh")
    assert out2.shape == (1000, hidden_dims[-1])
    assert out2.dtype == jnp.bfloat16
    assert jnp.allclose(out2.astype(jnp.float32), ref2, atol=3e-2, rtol=3e-2)

    print("KERNEL_OK")
</pallas_src>

<mosaic_0001>
module attributes {stable_mosaic.version = 11 : i64} {
  func.func @kernel(%arg0: i32, %arg1: memref<8x32xf32, #tpu.memory_space<vmem>>, %arg2: memref<32x128xbf16, #tpu.memory_space<vmem>>, %arg3: memref<1x128xf32, #tpu.memory_space<vmem>>, %arg4: memref<128x128xbf16, #tpu.memory_space<vmem>>, %arg5: memref<1x128xf32, #tpu.memory_space<vmem>>, %arg6: memref<8x128xf32, #tpu.memory_space<vmem>>) attributes {dimension_semantics = [#tpu.dimension_semantics<parallel>], iteration_bounds = array<i64: 1>, scalar_prefetch = 0 : i64, scratch_operands = 0 : i64, tpu.core_type = #tpu.core_type<tc>, window_params = [{transform_indices = @transform_0, window_bounds = array<i64: 8, 32>}, {pipeline_mode = #tpu.pipeline_mode<synchronous>, transform_indices = @transform_1, window_bounds = array<i64: 32, 128>}, {pipeline_mode = #tpu.pipeline_mode<synchronous>, transform_indices = @transform_2, window_bounds = array<i64: 1, 128>}, {pipeline_mode = #tpu.pipeline_mode<synchronous>, transform_indices = @transform_3, window_bounds = array<i64: 128, 128>}, {pipeline_mode = #tpu.pipeline_mode<synchronous>, transform_indices = @transform_4, window_bounds = array<i64: 1, 128>}, {transform_indices = @transform_5, window_bounds = array<i64: 8, 128>}]} {
    %c0 = arith.constant 0 : index
    %c0_0 = arith.constant 0 : index
    %0 = vector.load %arg1[%c0, %c0_0] : memref<8x32xf32, #tpu.memory_space<vmem>>, vector<8x32xf32>
    %1 = arith.truncf %0 : vector<8x32xf32> to vector<8x32xbf16>
    %c0_1 = arith.constant 0 : index
    %c0_2 = arith.constant 0 : index
    %2 = vector.load %arg2[%c0_1, %c0_2] : memref<32x128xbf16, #tpu.memory_space<vmem>>, vector<32x128xbf16>
    %cst = arith.constant dense<0.000000e+00> : vector<8x128xf32>
    %3 = tpu.matmul %1, %2, %cst {dimension_numbers = #tpu.dot_dimension_numbers<[1], [0], [0], [1], [0, 0, 1, 1], [], []>} : vector<8x32xbf16>, vector<32x128xbf16>, vector<8x128xf32> -> vector<8x128xf32>
    %c0_3 = arith.constant 0 : index
    %c0_4 = arith.constant 0 : index
    %4 = vector.load %arg3[%c0_3, %c0_4] : memref<1x128xf32, #tpu.memory_space<vmem>>, vector<1x128xf32>
    %5 = vector.broadcast %4 : vector<1x128xf32> to vector<8x128xf32>
    %6 = arith.addf %3, %5 : vector<8x128xf32>
    %7 = math.tanh %6 : vector<8x128xf32>
    %8 = arith.truncf %7 : vector<8x128xf32> to vector<8x128xbf16>
    %c0_5 = arith.constant 0 : index
    %c0_6 = arith.constant 0 : index
    %9 = vector.load %arg4[%c0_5, %c0_6] : memref<128x128xbf16, #tpu.memory_space<vmem>>, vector<128x128xbf16>
    %cst_7 = arith.constant dense<0.000000e+00> : vector<8x128xf32>
    %10 = tpu.matmul %8, %9, %cst_7 {dimension_numbers = #tpu.dot_dimension_numbers<[1], [0], [0], [1], [0, 0, 1, 1], [], []>} : vector<8x128xbf16>, vector<128x128xbf16>, vector<8x128xf32> -> vector<8x128xf32>
    %c0_8 = arith.constant 0 : index
    %c0_9 = arith.constant 0 : index
    %11 = vector.load %arg5[%c0_8, %c0_9] : memref<1x128xf32, #tpu.memory_space<vmem>>, vector<1x128xf32>
    %12 = vector.broadcast %11 : vector<1x128xf32> to vector<8x128xf32>
    %13 = arith.addf %10, %12 : vector<8x128xf32>
    %14 = math.tanh %13 : vector<8x128xf32>
    %c0_10 = arith.constant 0 : index
    %c0_11 = arith.constant 0 : index
    %15 = vector.load %arg6[%c0_10, %c0_11] : memref<8x128xf32, #tpu.memory_space<vmem>>, vector<8x128xf32>
    tpu.vector_store %arg6[%c0_10, %c0_11], %14 {strides = array<i32>} : memref<8x128xf32, #tpu.memory_space<vmem>>, vector<8x128xf32>,
    return
  }
  func.func @transform_0(%arg0: i32) -> (i32, i32) {
    %c0_i32 = arith.constant 0 : i32
    %c0_i32_0 = arith.constant 0 : i32
    return %arg0, %c0_i32 : i32, i32
  }
  func.func @transform_1(%arg0: i32) -> (i32, i32) {
    %c0_i32 = arith.constant 0 : i32
    %c0_i32_0 = arith.constant 0 : i32
    %c0_i32_1 = arith.constant 0 : i32
    return %c0_i32, %c0_i32_0 : i32, i32
  }
  func.func @transform_2(%arg0: i32) -> (i32, i32) {
    %c0_i32 = arith.constant 0 : i32
    %c0_i32_0 = arith.constant 0 : i32
    %c0_i32_1 = arith.constant 0 : i32
    return %c0_i32, %c0_i32_0 : i32, i32
  }
  func.func @transform_3(%arg0: i32) -> (i32, i32) {
    %c0_i32 = arith.constant 0 : i32
    %c0_i32_0 = arith.constant 0 : i32
    %c0_i32_1 = arith.constant 0 : i32
    return %c0_i32, %c0_i32_0 : i32, i32
  }
  func.func @transform_4(%arg0: i32) -> (i32, i32) {
    %c0_i32 = arith.constant 0 : i32
    %c0_i32_0 = arith.constant 0 : i32
    %c0_i32_1 = arith.constant 0 : i32
    return %c0_i32, %c0_i32_0 : i32, i32
  }
  func.func @transform_5(%arg0: i32) -> (i32, i32) {
    %c0_i32 = arith.constant 0 : i32
    %c0_i32_0 = arith.constant 0 : i32
    return %arg0, %c0_i32 : i32, i32
  }
}

module attributes {stable_mosaic.version = 11 : i64} {
  func.func @kernel(%arg0: i32, %arg1: memref<8x32xf32, #tpu.memory_space<vmem>>, %arg2: memref<32x128xbf16, #tpu.memory_space<vmem>>, %arg3: memref<1x128xf32, #tpu.memory_space<vmem>>, %arg4: memref<128x128xbf16, #tpu.memory_space<vmem>>, %arg5: memref<1x128xf32, #tpu.memory_space<vmem>>, %arg6: memref<8x128xf32, #tpu.memory_space<vmem>>) attributes {dimension_semantics = [#tpu.dimension_semantics<parallel>], iteration_bounds = array<i64: 1>, scalar_prefetch = 0 : i64, scratch_operands = 0 : i64, tpu.core_type = #tpu.core_type<tc>, window_params = [{transform_indices = @transform_0, window_bounds = array<i64: 8, 32>}, {pipeline_mode = #tpu.pipeline_mode<synchronous>, transform_indices = @transform_1, window_bounds = array<i64: 32, 128>}, {pipeline_mode = #tpu.pipeline_mode<synchronous>, transform_indices = @transform_2, window_bounds = array<i64: 1, 128>}, {pipeline_mode = #tpu.pipeline_mode<synchronous>, transform_indices = @transform_3, window_bounds = array<i64: 128, 128>}, {pipeline_mode = #tpu.pipeline_mode<synchronous>, transform_indices = @transform_4, window_bounds = array<i64: 1, 128>}, {transform_indices = @transform_5, window_bounds = array<i64: 8, 128>}]} {
    %c0 = arith.constant 0 : index
    %c0_0 = arith.constant 0 : index
    %0 = vector.load %arg1[%c0, %c0_0] : memref<8x32xf32, #tpu.memory_space<vmem>>, vector<8x32xf32>
    %1 = arith.truncf %0 : vector<8x32xf32> to vector<8x32xbf16>
    %c0_1 = arith.constant 0 : index
    %c0_2 = arith.constant 0 : index
    %2 = vector.load %arg2[%c0_1, %c0_2] : memref<32x128xbf16, #tpu.memory_space<vmem>>, vector<32x128xbf16>
    %cst = arith.constant dense<0.000000e+00> : vector<8x128xf32>
    %3 = tpu.matmul %1, %2, %cst {dimension_numbers = #tpu.dot_dimension_numbers<[1], [0], [0], [1], [0, 0, 1, 1], [], []>} : vector<8x32xbf16>, vector<32x128xbf16>, vector<8x128xf32> -> vector<8x128xf32>
    %c0_3 = arith.constant 0 : index
    %c0_4 = arith.constant 0 : index
    %4 = vector.load %arg3[%c0_3, %c0_4] : memref<1x128xf32, #tpu.memory_space<vmem>>, vector<1x128xf32>
    %5 = vector.broadcast %4 : vector<1x128xf32> to vector<8x128xf32>
    %6 = arith.addf %3, %5 : vector<8x128xf32>
    %7 = math.tanh %6 : vector<8x128xf32>
    %8 = arith.truncf %7 : vector<8x128xf32> to vector<8x128xbf16>
    %c0_5 = arith.constant 0 : index
    %c0_6 = arith.constant 0 : index
    %9 = vector.load %arg4[%c0_5, %c0_6] : memref<128x128xbf16, #tpu.memory_space<vmem>>, vector<128x128xbf16>
    %cst_7 = arith.constant dense<0.000000e+00> : vector<8x128xf32>
    %10 = tpu.matmul %8, %9, %cst_7 {dimension_numbers = #tpu.dot_dimension_numbers<[1], [0], [0], [1], [0, 0, 1, 1], [], []>} : vector<8x128xbf16>, vector<128x128xbf16>, vector<8x128xf32> -> vector<8x128xf32>
    %c0_8 = arith.constant 0 : index
    %c0_9 = arith.constant 0 : index
    %11 = vector.load %arg5[%c0_8, %c0_9] : memref<1x128xf32, #tpu.memory_space<vmem>>, vector<1x128xf32>
    %12 = vector.broadcast %11 : vector<1x128xf32> to vector<8x128xf32>
    %13 = arith.addf %10, %12 : vector<8x128xf32>
    %14 = math.tanh %13 : vector<8x128xf32>
    %c0_10 = arith.constant 0 : index
    %c0_11 = arith.constant 0 : index
    %15 = vector.load %arg6[%c0_10, %c0_11] : memref<8x128xf32, #tpu.memory_space<vmem>>, vector<8x128xf32>
    tpu.vector_store %arg6[%c0_10, %c0_11], %14 {strides = array<i32>} : memref<8x128xf32, #tpu.memory_space<vmem>>, vector<8x128xf32>,
    return
  }
  func.func @transform_0(%arg0: i32) -> (i32, i32) {
    %c0_i32 = arith.constant 0 : i32
    %c0_i32_0 = arith.constant 0 : i32
    return %arg0, %c0_i32 : i32, i32
  }
  func.func @transform_1(%arg0: i32) -> (i32, i32) {
    %c0_i32 = arith.constant 0 : i32
    %c0_i32_0 = arith.constant 0 : i32
    %c0_i32_1 = arith.constant 0 : i32
    return %c0_i32, %c0_i32_0 : i32, i32
  }
  func.func @transform_2(%arg0: i32) -> (i32, i32) {
    %c0_i32 = arith.constant 0 : i32
    %c0_i32_0 = arith.constant 0 : i32
    %c0_i32_1 = arith.constant 0 : i32
    return %c0_i32, %c0_i32_0 : i32, i32
  }
  func.func @transform_3(%arg0: i32) -> (i32, i32) {
    %c0_i32 = arith.constant 0 : i32
    %c0_i32_0 = arith.constant 0 : i32
    %c0_i32_1 = arith.constant 0 : i32
    return %c0_i32, %c0_i32_0 : i32, i32
  }
  func.func @transform_4(%arg0: i32) -> (i32, i32) {
    %c0_i32 = arith.constant 0 : i32
    %c0_i32_0 = arith.constant 0 : i32
    %c0_i32_1 = arith.constant 0 : i32
    return %c0_i32, %c0_i32_0 : i32, i32
  }
  func.func @transform_5(%arg0: i32) -> (i32, i32) {
    %c0_i32 = arith.constant 0 : i32
    %c0_i32_0 = arith.constant 0 : i32
    return %arg0, %c0_i32 : i32, i32
  }
}

</mosaic_0001>

<bundles_post_ra>
// kernel: tpu_custom_call.1
= control target key start
LH: loop header
LB: loop body
LE: loop exit
PB: predicated region body
PF: predicated region fallthrough
CT: control target
= control target key end

     0   :  { %10 = vsyncpa [#allocation3], 0  ;;  %s528_s0 = inlined_call_operand.hbm [shape: f32[8,32], index: 0, kind: input, shape index: {}]   ;;  %s529_s1 = inlined_call_operand.hbm [shape: bf16[32,128], index: 1, kind: input, shape index: {}]   ;;  %s530_s2 = inlined_call_operand.vmem [shape: f32[1,128], index: 2, kind: input, shape index: {}]   ;;  %s531_s3 = inlined_call_operand.hbm [shape: bf16[128,128], index: 3, kind: input, shape index: {}]   ;;  %s532_s4 = inlined_call_operand.vmem [shape: f32[1,128], index: 4, kind: input, shape index: {}]   ;;  %s533_s5 = inlined_call_operand.hbm [shape: f32[8,128], index: 5, kind: output, shape index: {}]  }
   0x1   :  { %11 = vsyncpa [#allocation6], 0 }
   0x2   :  { %12 = vsyncpa [#allocation4], 0  ;;  %s430_s18 = smov [#allocation5]   ;;  %s336_s22 = scalar_lea.hbm %s529_s1, 256 }
   0x3   :  { %s28_s19 = sshll.u32 %s430_s18, 4  ;;  %p337_p0 = scmp.ne.s32.totalorder %s529_s1, %s336_s22  ;;  %s29_s19 = int_to_ptr.vmem [resolvable:$true] %s28_s19 }
   0x4   :  { %p340_p1 = scmp.lt.u32.totalorder %s336_s22, %s529_s1 }
   0x6   :  { %p342_p2 = pnand %p340_p1, %p337_p0 }
   0x8   :  { %345 = shalt.err (!%p342_p2)
}
   0x9   :  { %s346_s27 = scalar_lea.vmem %s29_s19, 256  ;;  %p351_p4 = scmp.lt.s32.totalorder %s29_s19, %s29_s19 }
   0xa   :  { %p347_p3 = scmp.ne.s32.totalorder %s29_s19, %s346_s27  ;;  %p352_p5 = scmp.lt.s32.totalorder %s346_s27, %s346_s27 }
   0xc   :  { %p353_p6 = por %p352_p5, %p351_p4 }
   0xe   :  { %p354_p7 = pnand %p353_p6, %p347_p3 }
  0x10   :  { %357 = shalt.err (!%p354_p7)
}
  0x11   :  { %s431_s28 = smov 64   ;;  %s432_s29 = smov 4  }
  0x12   :  { %34 = dma.hbm_to_vmem [thread:$0]  %s529_s1, 256, %s29_s19, [#allocation6], %s431_s28, %s431_s28, %s432_s29  }
  0x13   :  { %s433_s7 = smov [#allocation2]   ;;  %s434_s9 = smov [#allocation7]  }
  0x14   :  { %s19_s8 = sshll.u32 %s433_s7, 4  ;;  %s42_s10 = sshll.u32 %s434_s9, 4  ;;  %s20_s8 = int_to_ptr.vmem [resolvable:$true] %s19_s8  ;;  %s43_s10 = int_to_ptr.vmem [resolvable:$true] %s42_s10 }
  0x15   :  { %s358_s13 = scalar_lea.hbm %s528_s0, 128 }
  0x16   :  { %p359_p8 = scmp.ne.s32.totalorder %s528_s0, %s358_s13  ;;  %p362_p9 = scmp.lt.u32.totalorder %s358_s13, %s528_s0 }
  0x18   :  { %p364_p10 = pnand %p362_p9, %p359_p8 }
  0x1a   :  { %367 = shalt.err (!%p364_p10)
}
  0x1b   :  { %s368_s1 = scalar_lea.vmem %s20_s8, 128  ;;  %p373_p12 = scmp.lt.s32.totalorder %s20_s8, %s20_s8 }
  0x1c   :  { %p369_p11 = scmp.ne.s32.totalorder %s20_s8, %s368_s1  ;;  %p374_p13 = scmp.lt.s32.totalorder %s368_s1, %s368_s1 }
  0x1e   :  { %p375_p0 = por %p374_p13, %p373_p12 }
  0x20   :  { %p376_p1 = pnand %p375_p0, %p369_p11 }
  0x22   :  { %379 = shalt.err (!%p376_p1)
}
  0x23   :  { %22 = dma.hbm_to_vmem [thread:$0]  %s528_s0, 128, %s20_s8, [#allocation3]  }
  0x24   :  { %s380_s22 = scalar_lea.hbm %s531_s3, 1024 }
  0x25   :  { %p381_p2 = scmp.ne.s32.totalorder %s531_s3, %s380_s22  ;;  %p384_p3 = scmp.lt.u32.totalorder %s380_s22, %s531_s3 }
  0x27   :  { %p386_p4 = pnand %p384_p3, %p381_p2 }
  0x29   :  { %389 = shalt.err (!%p386_p4)
}
  0x2a   :  { %s390_s27 = scalar_lea.vmem %s43_s10, 1024  ;;  %p395_p6 = scmp.lt.s32.totalorder %s43_s10, %s43_s10 }
  0x2b   :  { %p391_p5 = scmp.ne.s32.totalorder %s43_s10, %s390_s27  ;;  %p396_p7 = scmp.lt.s32.totalorder %s390_s27, %s390_s27 }
  0x2d   :  { %p397_p8 = por %p396_p7, %p395_p6 }
  0x2f   :  { %p398_p9 = pnand %p397_p8, %p391_p5 }
  0x31   :  { %401 = shalt.err (!%p398_p9)
}
  0x32   :  { %48 = dma.hbm_to_vmem [thread:$0]  %s531_s3, 1024, %s43_s10, [#allocation6], %s431_s28, %s431_s28, %s432_s29  }
  0x33   :  { %424 = dma.done.wait [#allocation3], 128  }
  0x34   :  { %425 = vsyncadd [#allocation3], 4294967168 }
  0x35   :  { %426 = dma.done.wait [#allocation6], 1280  }
  0x36   :  { %427 = vsyncadd [#allocation6], 4294966016  ;;  %v435_v0 = vmov 0.0   ;;  %vm436_vm0 = vmmov 0   ;;  %v322_v1 = vld [vmem:[#allocation5] sm:$0xff]   ;;  %v323_v2 = vld [vmem:[#allocation5 + $0x8] sm:$0xff]  }
  0x37   :  { %286 = vmatprep.subr.bf16.mxu0 %v435_v0  ;;  %290 = vmatprep.mubr.msk.bf16.mxu0 %vm436_vm0, %v435_v0  ;;  %v61_v3 = vld [vmem:[#allocation2] sm:$0xff]  ;;  %v324_v4 = vld [vmem:[#allocation7] sm:$0xff]   ;;  %vm86_vm1 = vcmask 261120   ;;  %v326_v7 = vld [vmem:[#allocation7 + $0x10] sm:$0xff]  }
  0x38   :  { %294 = vmatprep.subr.bf16.mxu1 %v435_v0  ;;  %310 = vmatprep.mubr.msk.bf16.mxu1 %vm436_vm0, %v435_v0  ;;  %v62_v5 = vpack.c.bf16 %v61_v3, %v61_v3  ;;  %v325_v6 = vld [vmem:[#allocation7 + $0x8] sm:$0xff]   ;;  %v327_v8 = vld [vmem:[#allocation7 + $0x18] sm:$0xff]   ;;  %v328_v9 = vld [vmem:[#allocation7 + $0x20] sm:$0xff]  }
  0x39   :  { %287 = vmatpush3.bf16.msra.mxu0 %v322_v1  ;;  %295 = vmatpush3.bf16.msra.mxu1 %v324_v4  ;;  %v329_v10 = vld [vmem:[#allocation7 + $0x28] sm:$0xff]   ;;  %v330_v11 = vld [vmem:[#allocation7 + $0x30] sm:$0xff]   ;;  %v331_v12 = vld [vmem:[#allocation7 + $0x38] sm:$0xff]  }
  0x3a   :  { %288 = vmatprep.subr.bf16.mxu0 %v435_v0  ;;  %296 = vmatprep.subr.bf16.mxu1 %v435_v0  ;;  %v261_v13 = vld [vmem:[%s530_s2] ss:$0 sm:$0xff]  ;;  %s437_s2 = smov [#allocation8]  }
  0x3b   :  { %v265_v21 = vld [vmem:[%s532_s4] ss:$0 sm:$0xff]  ;;  %s251_s7 = sshll.u32 %s437_s2, 4  ;;  %s252_s7 = int_to_ptr.vmem [resolvable:$true] %s251_s7 }
  0x3c   :  { %s402_s8 = scalar_lea.vmem %s252_s7, 128  ;;  %p407_p11 = scmp.lt.s32.totalorder %s252_s7, %s252_s7 }
  0x3d   :  { %289 = vmatpush3.bf16.msra.mxu0 %v323_v2  ;;  %297 = vmatpush3.bf16.msra.mxu1 %v325_v6  ;;  %p403_p10 = scmp.ne.s32.totalorder %s252_s7, %s402_s8  ;;  %p408_p12 = scmp.lt.s32.totalorder %s402_s8, %s402_s8 }
  0x3e   :  { %298 = vmatprep.subr.bf16.mxu1 %v435_v0 }
  0x3f   :  { %p409_p13 = por %p408_p12, %p407_p11 }
  0x40   :  { %291 = vmatmul.mubr.msk.bf16.vlgmr.msra.gmra.mrb[0].mxu0 %vm86_vm1, %v62_v5 }
  0x41   :  { %299 = vmatpush3.bf16.msra.mxu1 %v326_v7  ;;  %p410_p0 = pnand %p409_p13, %p403_p10 }
  0x42   :  { %300 = vmatprep.subr.bf16.mxu1 %v435_v0 }
  0x45   :  { %301 = vmatpush3.bf16.msra.mxu1 %v327_v8 }
  0x46   :  { %302 = vmatprep.subr.bf16.mxu1 %v435_v0 }
  0x49   :  { %303 = vmatpush3.bf16.msra.mxu1 %v328_v9 }
  0x4a   :  { %304 = vmatprep.subr.bf16.mxu1 %v435_v0 }
  0x4d   :  { %305 = vmatpush3.bf16.msra.mxu1 %v329_v10 }
  0x4e   :  { %306 = vmatprep.subr.bf16.mxu1 %v435_v0 }
  0x51   :  { %307 = vmatpush3.bf16.msra.mxu1 %v330_v11 }
  0x52   :  { %308 = vmatprep.subr.bf16.mxu1 %v435_v0 }
  0x55   :  { %309 = vmatpush3.bf16.msra.mxu1 %v331_v12 }
 0x113   :  { %v124_v14 = vpop.f32.mrb[0].mxu0 }
 0x114   :  { %v125_v15 = vadd.f32 %v261_v13, %v124_v14  ;;  %v292_v16 = vpop.f32.mrb[1].mxu0 }
 0x115   :  { %v127_v17 = vpop.f32.mrb[2].mxu0 }
 0x116   :  { %332 = vtanh.f32 %v125_v15  ;;  %v293_v18 = vpop.f32.mrb[3].mxu0 }
 0x120   :  { %v333_v19 = vpop.eup %332 }
 0x121   :  { %v131_v20 = vpack.c.bf16 %v333_v19, %v333_v19 }
 0x123   :  { %311 = vmatmul.mubr.bf16.vlgmr.msra.gmra.mrb[0].mxu1 %v131_v20 }
 0x1f6   :  { %v237_v22 = vpop.f32.mrb[0].mxu1 }
 0x1f7   :  { %v238_v23 = vadd.f32 %v265_v21, %v237_v22  ;;  %v312_v24 = vpop.f32.mrb[1].mxu1 }
 0x1f8   :  { %v240_v25 = vpop.f32.mrb[2].mxu1 }
 0x1f9   :  { %334 = vtanh.f32 %v238_v23  ;;  %v313_v26 = vpop.f32.mrb[3].mxu1 }
 0x203   :  { %v335_v27 = vpop.eup %334 }
 0x204   :  { %244 = vst [vmem:[#allocation8] sm:$0xff] %v335_v27 }
 0x205   :  { %413 = shalt.err (!%p410_p0)
}
 0x206   :  { %s414_s10 = scalar_lea.hbm %s533_s5, 128 }
 0x207   :  { %p415_p1 = scmp.ne.s32.totalorder %s533_s5, %s414_s10  ;;  %p418_p2 = scmp.lt.u32.totalorder %s414_s10, %s533_s5 }
 0x209   :  { %p420_p3 = pnand %p418_p2, %p415_p1 }
 0x20b   :  { %423 = shalt.err (!%p420_p3)
}
 0x20c   :  { %254 = dma.vmem_to_hbm [thread:$0]  %s252_s7, 128, %s533_s5, [#allocation4]  }
 0x20d   :  { %428 = dma.done.wait [#allocation4], 128  }
 0x20e   :  { %429 = vsyncadd [#allocation4], 4294967168 }
 0x20f   :  { %258 = vsyncpa [#allocation3], 1 }
 0x210   :  { %259 = vsyncpa [#allocation6], 1 }
 0x211   :  { %260 = vsyncpa [#allocation4], 1 }

// kernel: tpu_custom_call.1
= control target key start
LH: loop header
LB: loop body
LE: loop exit
PB: predicated region body
PF: predicated region fallthrough
CT: control target
= control target key end

     0   :  { %10 = vsyncpa [#allocation3], 0  ;;  %s528_s0 = inlined_call_operand.hbm [shape: f32[8,32], index: 0, kind: input, shape index: {}]   ;;  %s529_s1 = inlined_call_operand.hbm [shape: bf16[32,128], index: 1, kind: input, shape index: {}]   ;;  %s530_s2 = inlined_call_operand.vmem [shape: f32[1,128], index: 2, kind: input, shape index: {}]   ;;  %s531_s3 = inlined_call_operand.hbm [shape: bf16[128,128], index: 3, kind: input, shape index: {}]   ;;  %s532_s4 = inlined_call_operand.vmem [shape: f32[1,128], index: 4, kind: input, shape index: {}]   ;;  %s533_s5 = inlined_call_operand.hbm [shape: f32[8,128], index: 5, kind: output, shape index: {}]  }
   0x1   :  { %11 = vsyncpa [#allocation6], 0 }
   0x2   :  { %12 = vsyncpa [#allocation4], 0  ;;  %s430_s18 = smov [#allocation5]   ;;  %s336_s22 = scalar_lea.hbm %s529_s1, 256 }
   0x3   :  { %s28_s19 = sshll.u32 %s430_s18, 4  ;;  %p337_p0 = scmp.ne.s32.totalorder %s529_s1, %s336_s22  ;;  %s29_s19 = int_to_ptr.vmem [resolvable:$true] %s28_s19 }
   0x4   :  { %p340_p1 = scmp.lt.u32.totalorder %s336_s22, %s529_s1 }
   0x6   :  { %p342_p2 = pnand %p340_p1, %p337_p0 }
   0x8   :  { %345 = shalt.err (!%p342_p2)
}
   0x9   :  { %s346_s27 = scalar_lea.vmem %s29_s19, 256  ;;  %p351_p4 = scmp.lt.s32.totalorder %s29_s19, %s29_s19 }
   0xa   :  { %p347_p3 = scmp.ne.s32.totalorder %s29_s19, %s346_s27  ;;  %p352_p5 = scmp.lt.s32.totalorder %s346_s27, %s346_s27 }
   0xc   :  { %p353_p6 = por %p352_p5, %p351_p4 }
   0xe   :  { %p354_p7 = pnand %p353_p6, %p347_p3 }
  0x10   :  { %357 = shalt.err (!%p354_p7)
}
  0x11   :  { %s431_s28 = smov 64   ;;  %s432_s29 = smov 4  }
  0x12   :  { %34 = dma.hbm_to_vmem [thread:$0]  %s529_s1, 256, %s29_s19, [#allocation6], %s431_s28, %s431_s28, %s432_s29  }
  0x13   :  { %s433_s7 = smov [#allocation2]   ;;  %s434_s9 = smov [#allocation7]  }
  0x14   :  { %s19_s8 = sshll.u32 %s433_s7, 4  ;;  %s42_s10 = sshll.u32 %s434_s9, 4  ;;  %s20_s8 = int_to_ptr.vmem [resolvable:$true] %s19_s8  ;;  %s43_s10 = int_to_ptr.vmem [resolvable:$true] %s42_s10 }
  0x15   :  { %s358_s13 = scalar_lea.hbm %s528_s0, 128 }
  0x16   :  { %p359_p8 = scmp.ne.s32.totalorder %s528_s0, %s358_s13  ;;  %p362_p9 = scmp.lt.u32.totalorder %s358_s13, %s528_s0 }
  0x18   :  { %p364_p10 = pnand %p362_p9, %p359_p8 }
  0x1a   :  { %367 = shalt.err (!%p364_p10)
}
  0x1b   :  { %s368_s1 = scalar_lea.vmem %s20_s8, 128  ;;  %p373_p12 = scmp.lt.s32.totalorder %s20_s8, %s20_s8 }
  0x1c   :  { %p369_p11 = scmp.ne.s32.totalorder %s20_s8, %s368_s1  ;;  %p374_p13 = scmp.lt.s32.totalorder %s368_s1, %s368_s1 }
  0x1e   :  { %p375_p0 = por %p374_p13, %p373_p12 }
  0x20   :  { %p376_p1 = pnand %p375_p0, %p369_p11 }
  0x22   :  { %379 = shalt.err (!%p376_p1)
}
  0x23   :  { %22 = dma.hbm_to_vmem [thread:$0]  %s528_s0, 128, %s20_s8, [#allocation3]  }
  0x24   :  { %s380_s22 = scalar_lea.hbm %s531_s3, 1024 }
  0x25   :  { %p381_p2 = scmp.ne.s32.totalorder %s531_s3, %s380_s22  ;;  %p384_p3 = scmp.lt.u32.totalorder %s380_s22, %s531_s3 }
  0x27   :  { %p386_p4 = pnand %p384_p3, %p381_p2 }
  0x29   :  { %389 = shalt.err (!%p386_p4)
}
  0x2a   :  { %s390_s27 = scalar_lea.vmem %s43_s10, 1024  ;;  %p395_p6 = scmp.lt.s32.totalorder %s43_s10, %s43_s10 }
  0x2b   :  { %p391_p5 = scmp.ne.s32.totalorder %s43_s10, %s390_s27  ;;  %p396_p7 = scmp.lt.s32.totalorder %s390_s27, %s390_s27 }
  0x2d   :  { %p397_p8 = por %p396_p7, %p395_p6 }
  0x2f   :  { %p398_p9 = pnand %p397_p8, %p391_p5 }
  0x31   :  { %401 = shalt.err (!%p398_p9)
}
  0x32   :  { %48 = dma.hbm_to_vmem [thread:$0]  %s531_s3, 1024, %s43_s10, [#allocation6], %s431_s28, %s431_s28, %s432_s29  }
  0x33   :  { %424 = dma.done.wait [#allocation3], 128  }
  0x34   :  { %425 = vsyncadd [#allocation3], 4294967168 }
  0x35   :  { %426 = dma.done.wait [#allocation6], 1280  }
  0x36   :  { %427 = vsyncadd [#allocation6], 4294966016  ;;  %v435_v0 = vmov 0.0   ;;  %vm436_vm0 = vmmov 0   ;;  %v322_v1 = vld [vmem:[#allocation5] sm:$0xff]   ;;  %v323_v2 = vld [vmem:[#allocation5 + $0x8] sm:$0xff]  }
  0x37   :  { %286 = vmatprep.subr.bf16.mxu0 %v435_v0  ;;  %290 = vmatprep.mubr.msk.bf16.mxu0 %vm436_vm0, %v435_v0  ;;  %v61_v3 = vld [vmem:[#allocation2] sm:$0xff]  ;;  %v324_v4 = vld [vmem:[#allocation7] sm:$0xff]   ;;  %vm86_vm1 = vcmask 261120   ;;  %v326_v7 = vld [vmem:[#allocation7 + $0x10] sm:$0xff]  }
  0x38   :  { %294 = vmatprep.subr.bf16.mxu1 %v435_v0  ;;  %310 = vmatprep.mubr.msk.bf16.mxu1 %vm436_vm0, %v435_v0  ;;  %v62_v5 = vpack.c.bf16 %v61_v3, %v61_v3  ;;  %v325_v6 = vld [vmem:[#allocation7 + $0x8] sm:$0xff]   ;;  %v327_v8 = vld [vmem:[#allocation7 + $0x18] sm:$0xff]   ;;  %v328_v9 = vld [vmem:[#allocation7 + $0x20] sm:$0xff]  }
  0x39   :  { %287 = vmatpush3.bf16.msra.mxu0 %v322_v1  ;;  %295 = vmatpush3.bf16.msra.mxu1 %v324_v4  ;;  %v329_v10 = vld [vmem:[#allocation7 + $0x28] sm:$0xff]   ;;  %v330_v11 = vld [vmem:[#allocation7 + $0x30] sm:$0xff]   ;;  %v331_v12 = vld [vmem:[#allocation7 + $0x38] sm:$0xff]  }
  0x3a   :  { %288 = vmatprep.subr.bf16.mxu0 %v435_v0  ;;  %296 = vmatprep.subr.bf16.mxu1 %v435_v0  ;;  %v261_v13 = vld [vmem:[%s530_s2] ss:$0 sm:$0xff]  ;;  %s437_s2 = smov [#allocation8]  }
  0x3b   :  { %v265_v21 = vld [vmem:[%s532_s4] ss:$0 sm:$0xff]  ;;  %s251_s7 = sshll.u32 %s437_s2, 4  ;;  %s252_s7 = int_to_ptr.vmem [resolvable:$true] %s251_s7 }
  0x3c   :  { %s402_s8 = scalar_lea.vmem %s252_s7, 128  ;;  %p407_p11 = scmp.lt.s32.totalorder %s252_s7, %s252_s7 }
  0x3d   :  { %289 = vmatpush3.bf16.msra.mxu0 %v323_v2  ;;  %297 = vmatpush3.bf16.msra.mxu1 %v325_v6  ;;  %p403_p10 = scmp.ne.s32.totalorder %s252_s7, %s402_s8  ;;  %p408_p12 = scmp.lt.s32.totalorder %s402_s8, %s402_s8 }
  0x3e   :  { %298 = vmatprep.subr.bf16.mxu1 %v435_v0 }
  0x3f   :  { %p409_p13 = por %p408_p12, %p407_p11 }
  0x40   :  { %291 = vmatmul.mubr.msk.bf16.vlgmr.msra.gmra.mrb[0].mxu0 %vm86_vm1, %v62_v5 }
  0x41   :  { %299 = vmatpush3.bf16.msra.mxu1 %v326_v7  ;;  %p410_p0 = pnand %p409_p13, %p403_p10 }
  0x42   :  { %300 = vmatprep.subr.bf16.mxu1 %v435_v0 }
  0x45   :  { %301 = vmatpush3.bf16.msra.mxu1 %v327_v8 }
  0x46   :  { %302 = vmatprep.subr.bf16.mxu1 %v435_v0 }
  0x49   :  { %303 = vmatpush3.bf16.msra.mxu1 %v328_v9 }
  0x4a   :  { %304 = vmatprep.subr.bf16.mxu1 %v435_v0 }
  0x4d   :  { %305 = vmatpush3.bf16.msra.mxu1 %v329_v10 }
  0x4e   :  { %306 = vmatprep.subr.bf16.mxu1 %v435_v0 }
  0x51   :  { %307 = vmatpush3.bf16.msra.mxu1 %v330_v11 }
  0x52   :  { %308 = vmatprep.subr.bf16.mxu1 %v435_v0 }
  0x55   :  { %309 = vmatpush3.bf16.msra.mxu1 %v331_v12 }
 0x113   :  { %v124_v14 = vpop.f32.mrb[0].mxu0 }
 0x114   :  { %v125_v15 = vadd.f32 %v261_v13, %v124_v14  ;;  %v292_v16 = vpop.f32.mrb[1].mxu0 }
 0x115   :  { %v127_v17 = vpop.f32.mrb[2].mxu0 }
 0x116   :  { %332 = vtanh.f32 %v125_v15  ;;  %v293_v18 = vpop.f32.mrb[3].mxu0 }
 0x120   :  { %v333_v19 = vpop.eup %332 }
 0x121   :  { %v131_v20 = vpack.c.bf16 %v333_v19, %v333_v19 }
 0x123   :  { %311 = vmatmul.mubr.bf16.vlgmr.msra.gmra.mrb[0].mxu1 %v131_v20 }
 0x1f6   :  { %v237_v22 = vpop.f32.mrb[0].mxu1 }
 0x1f7   :  { %v238_v23 = vadd.f32 %v265_v21, %v237_v22  ;;  %v312_v24 = vpop.f32.mrb[1].mxu1 }
 0x1f8   :  { %v240_v25 = vpop.f32.mrb[2].mxu1 }
 0x1f9   :  { %334 = vtanh.f32 %v238_v23  ;;  %v313_v26 = vpop.f32.mrb[3].mxu1 }
 0x203   :  { %v335_v27 = vpop.eup %334 }
 0x204   :  { %244 = vst [vmem:[#allocation8] sm:$0xff] %v335_v27 }
 0x205   :  { %413 = shalt.err (!%p410_p0)
}
 0x206   :  { %s414_s10 = scalar_lea.hbm %s533_s5, 128 }
 0x207   :  { %p415_p1 = scmp.ne.s32.totalorder %s533_s5, %s414_s10  ;;  %p418_p2 = scmp.lt.u32.totalorder %s414_s10, %s533_s5 }
 0x209   :  { %p420_p3 = pnand %p418_p2, %p415_p1 }
 0x20b   :  { %423 = shalt.err (!%p420_p3)
}
 0x20c   :  { %254 = dma.vmem_to_hbm [thread:$0]  %s252_s7, 128, %s533_s5, [#allocation4]  }
 0x20d   :  { %428 = dma.done.wait [#allocation4], 128  }
 0x20e   :  { %429 = vsyncadd [#allocation4], 4294967168 }
 0x20f   :  { %258 = vsyncpa [#allocation3], 1 }
 0x210   :  { %259 = vsyncpa [#allocation6], 1 }
 0x211   :  { %260 = vsyncpa [#allocation4], 1 }

</bundles_post_ra>
